<compile_context>
chip_gen: v7x
topology: tpu7x:2x2x1
jax: 0.10.0
libtpu: 0.0.40
codegen_flags: <defaults>
</compile_context>

<pallas_src>
import jax
import jax.numpy as jnp
from jax.experimental import pallas as pl
from jax.experimental.pallas import tpu as pltpu


# ---------------------------------------------------------------------------
# Kernel
# ---------------------------------------------------------------------------
def _elu(x):
    # ELU(alpha=1): x if x > 0 else exp(x) - 1 (clamp exp arg on dead branch).
    return jnp.where(x > 0, x, jnp.exp(jnp.minimum(x, 0.0)) - 1.0)


def acmodel_kernel(x_ref,
                   w1_ref, b1_ref, w2_ref, b2_ref, w3_ref, b3_ref,
                   wfc_ref, bfc_ref, wh_ref, bh_ref,
                   logp_ref, value_ref):
    A = logp_ref.shape[-1]

    def dense(x_f32, w_ref, b_ref):
        # bf16 MXU inputs, f32 accumulation, single f32 bias add.
        y = jnp.dot(x_f32.astype(jnp.bfloat16), w_ref[...],
                    preferred_element_type=jnp.float32)
        return y + b_ref[...]

    x = x_ref[...].astype(jnp.float32)                    # (bt, 147)

    # image_conv: three conv layers, each one matmul + ELU.
    h = _elu(dense(x, w1_ref, b1_ref))                    # (bt, 512) = 4x4x32
    h = _elu(dense(h, w2_ref, b2_ref))                    # (bt, 128) = 2x2x32
    h = _elu(dense(h, w3_ref, b3_ref))                    # (bt,  32) = 1x1x32

    # fc: Linear(32, 256) + ReLU
    h = jnp.maximum(dense(h, wfc_ref, bfc_ref), 0.0)      # (bt, 256)

    # fused actor + critic_ext head: one (256, A+1) matmul.
    head = dense(h, wh_ref, bh_ref)                       # (bt, A+1)
    logits = head[:, :A]
    m = jnp.max(logits, axis=-1, keepdims=True)
    lse = m + jnp.log(jnp.sum(jnp.exp(logits - m), axis=-1, keepdims=True))
    logp_ref[...] = logits - lse                          # normalized log-probs
    value_ref[...] = head[:, A:A + 1]                     # (bt, 1)


# TODO(synk): use_memory=True (LSTMCell) and use_intcoefs paths are not
# implemented (module defaults are False / 0); critic_int is defined in
# __init__ but never used in forward, so it is omitted.
# TODO(synk): the Categorical distribution object has no Pallas equivalent;
# the kernel returns its normalized log-probabilities instead.


# ---------------------------------------------------------------------------
# Wrapper-side parameter plumbing (conv -> dense matmul, head fusion, bf16)
# ---------------------------------------------------------------------------
def _conv3x3_s2_p1_as_dense(w, b, H, W):
    """Fold a 3x3/stride-2/pad-1 conv on an HxW map into a dense matmul.

    Returns (BigW, big_b, Ho, Wo) such that for a feature map flattened as
    x[b, s*Cin + c] with s = ih*W + iw,
        out[b, p*Cout + d] = x @ BigW + big_b  ==  conv(x)[b, oh, ow, d]
    with p = oh*Wo + ow.  Zero padding == missing (all-zero) blocks.
    """
    Cin, Cout = int(w.shape[2]), int(w.shape[3])
    Ho = (H + 2 - 3) // 2 + 1
    Wo = (W + 2 - 3) // 2 + 1
    big = jnp.zeros((H * W * Cin, Ho * Wo * Cout), jnp.float32)
    for oh in range(Ho):
        for ow in range(Wo):
            p = oh * Wo + ow
            for kh in range(3):
                ih = 2 * oh + kh - 1
                if ih < 0 or ih >= H:
                    continue
                for kw in range(3):
                    iw = 2 * ow + kw - 1
                    if iw < 0 or iw >= W:
                        continue
                    s = ih * W + iw
                    big = big.at[s * Cin:(s + 1) * Cin,
                                 p * Cout:(p + 1) * Cout].set(w[kh, kw])
    big_b = jnp.tile(b, (1, Ho * Wo))                     # (1, Ho*Wo*Cout)
    return big, big_b, Ho, Wo


def pack_params(params, H=7, W=7):
    """One-time wrapper-side packing: conv->dense, head fusion, bf16 weights."""
    bw1, bb1, H1, W1 = _conv3x3_s2_p1_as_dense(params["w1"], params["b1"], H, W)
    bw2, bb2, H2, W2 = _conv3x3_s2_p1_as_dense(params["w2"], params["b2"], H1, W1)
    bw3, bb3, H3, W3 = _conv3x3_s2_p1_as_dense(params["w3"], params["b3"], H2, W2)
    assert H3 == 1 and W3 == 1, "model assumes final 1x1 spatial size (7x7 obs)"
    wh = jnp.concatenate([params["wa"], params["wce"]], axis=1)   # (256, A+1)
    bh = jnp.concatenate([params["ba"], params["bce"]], axis=1)   # (1, A+1)
    bf16 = jnp.bfloat16
    return {
        "w1": bw1.astype(bf16), "b1": bb1,
        "w2": bw2.astype(bf16), "b2": bb2,
        "w3": bw3.astype(bf16), "b3": bb3,
        "wfc": params["wfc"].astype(bf16), "bfc": params["bfc"],
        "wh": wh.astype(bf16), "bh": bh,
    }


def _pick_batch_tile(B):
    if B <= 128:
        return B
    for t in (256, 128, 64, 32, 16, 8):
        if B % t == 0:
            return t
    return B


def acmodel_forward(image, p):
    """image: (B, H, W, 3) NHWC.  Returns (log_probs (B, A), value_ext (B,))."""
    B = image.shape[0]
    x = image.reshape(B, -1).astype(jnp.float32)          # (B, H*W*3), lane-dense
    K = x.shape[1]
    A = p["wh"].shape[1] - 1

    bt = _pick_batch_tile(B)
    grid = (B // bt,)

    def rep2(arr):  # full-array weight block, revisited every batch tile
        return pl.BlockSpec(arr.shape, lambda i: (0, 0))

    in_specs = [
        pl.BlockSpec((bt, K), lambda i: (i, 0)),
        rep2(p["w1"]), rep2(p["b1"]),
        rep2(p["w2"]), rep2(p["b2"]),
        rep2(p["w3"]), rep2(p["b3"]),
        rep2(p["wfc"]), rep2(p["bfc"]),
        rep2(p["wh"]), rep2(p["bh"]),
    ]
    out_specs = (pl.BlockSpec((bt, A), lambda i: (i, 0)),
                 pl.BlockSpec((bt, 1), lambda i: (i, 0)))

    logp, v = pl.pallas_call(
        acmodel_kernel,
        out_shape=(jax.ShapeDtypeStruct((B, A), jnp.float32),
                   jax.ShapeDtypeStruct((B, 1), jnp.float32)),
        grid=grid,
        in_specs=in_specs,
        out_specs=out_specs,
        compiler_params=pltpu.CompilerParams(
            dimension_semantics=("parallel",)),
    )(x, p["w1"], p["b1"], p["w2"], p["b2"], p["w3"], p["b3"],
      p["wfc"], p["bfc"], p["wh"], p["bh"])
    return logp, v[:, 0]


# ---------------------------------------------------------------------------
# Parameter init (matches module structure; see TODO on init parity)
# ---------------------------------------------------------------------------
def init_params(key, action_space=7):
    relu_gain = 2.0 ** 0.5
    ortho_relu = jax.nn.initializers.orthogonal(scale=relu_gain)
    ortho_1 = jax.nn.initializers.orthogonal(scale=1.0)
    ks = jax.random.split(key, 6)
    params = {
        # conv weights: (KH, KW, Cin, Cout); biases 2D (1, C) for TPU layout
        "w1": ortho_relu(ks[0], (3, 3, 3, 32), jnp.float32),
        "b1": jnp.zeros((1, 32), jnp.float32),
        "w2": ortho_relu(ks[1], (3, 3, 32, 32), jnp.float32),
        "b2": jnp.zeros((1, 32), jnp.float32),
        "w3": ortho_relu(ks[2], (3, 3, 32, 32), jnp.float32),
        "b3": jnp.zeros((1, 32), jnp.float32),
        # fc: Linear(32, 256), relu gain
        "wfc": ortho_relu(ks[3], (32, 256), jnp.float32),
        "bfc": jnp.zeros((1, 256), jnp.float32),
        # actor: Linear(256, A), gain 1
        "wa": ortho_1(ks[4], (256, action_space), jnp.float32),
        "ba": jnp.zeros((1, action_space), jnp.float32),
        # critic_ext: Linear(256, 1), gain 1
        "wce": ortho_1(ks[5], (256, 1), jnp.float32),
        "bce": jnp.zeros((1, 1), jnp.float32),
    }
    # TODO(synk): PyTorch orthogonal init is drawn on (Cout, Cin*KH*KW); drawing
    # directly on (KH,KW,Cin,Cout) differs statistically (forward math is
    # unaffected).  Real checkpoints must be transposed to these layouts.
    return params


if __name__ == "__main__":
    key = jax.random.PRNGKey(0)
    k_img, k_par = jax.random.split(key)

    B, H, W, C = 2, 7, 7, 3            # MiniGrid-style observation
    action_space = 7
    image = jax.random.uniform(k_img, (B, H, W, C), jnp.float32)
    params = init_params(k_par, action_space=action_space)
    packed = pack_params(params, H=H, W=W)

    fwd = jax.jit(acmodel_forward)
    log_probs, value_ext = fwd(image, packed)
    jax.block_until_ready((log_probs, value_ext))

    assert log_probs.shape == (B, action_space)
    assert value_ext.shape == (B,)
    assert bool(jnp.all(jnp.isfinite(log_probs)))
    assert bool(jnp.all(jnp.isfinite(value_ext)))
    print("KERNEL_OK")
</pallas_src>

<mosaic_0001>
module attributes {stable_mosaic.version = 11 : i64} {
  func.func @acmodel_kernel(%arg0: i32, %arg1: memref<2x147xf32, #tpu.memory_space<vmem>>, %arg2: memref<147x512xbf16, #tpu.memory_space<vmem>>, %arg3: memref<1x512xf32, #tpu.memory_space<vmem>>, %arg4: memref<512x128xbf16, #tpu.memory_space<vmem>>, %arg5: memref<1x128xf32, #tpu.memory_space<vmem>>, %arg6: memref<128x32xbf16, #tpu.memory_space<vmem>>, %arg7: memref<1x32xf32, #tpu.memory_space<vmem>>, %arg8: memref<32x256xbf16, #tpu.memory_space<vmem>>, %arg9: memref<1x256xf32, #tpu.memory_space<vmem>>, %arg10: memref<256x8xbf16, #tpu.memory_space<vmem>>, %arg11: memref<1x8xf32, #tpu.memory_space<vmem>>, %arg12: memref<2x7xf32, #tpu.memory_space<vmem>>, %arg13: memref<2x1xf32, #tpu.memory_space<vmem>>) attributes {dimension_semantics = [#tpu.dimension_semantics<parallel>], iteration_bounds = array<i64: 1>, scalar_prefetch = 0 : i64, scratch_operands = 0 : i64, tpu.core_type = #tpu.core_type<tc>, window_params = [{transform_indices = @transform_0, window_bounds = array<i64: 2, 147>}, {pipeline_mode = #tpu.pipeline_mode<synchronous>, transform_indices = @transform_1, window_bounds = array<i64: 147, 512>}, {pipeline_mode = #tpu.pipeline_mode<synchronous>, transform_indices = @transform_2, window_bounds = array<i64: 1, 512>}, {pipeline_mode = #tpu.pipeline_mode<synchronous>, transform_indices = @transform_3, window_bounds = array<i64: 512, 128>}, {pipeline_mode = #tpu.pipeline_mode<synchronous>, transform_indices = @transform_4, window_bounds = array<i64: 1, 128>}, {pipeline_mode = #tpu.pipeline_mode<synchronous>, transform_indices = @transform_5, window_bounds = array<i64: 128, 32>}, {pipeline_mode = #tpu.pipeline_mode<synchronous>, transform_indices = @transform_6, window_bounds = array<i64: 1, 32>}, {pipeline_mode = #tpu.pipeline_mode<synchronous>, transform_indices = @transform_7, window_bounds = array<i64: 32, 256>}, {pipeline_mode = #tpu.pipeline_mode<synchronous>, transform_indices = @transform_8, window_bounds = array<i64: 1, 256>}, {pipeline_mode = #tpu.pipeline_mode<synchronous>, transform_indices = @transform_9, window_bounds = array<i64: 256, 8>}, {pipeline_mode = #tpu.pipeline_mode<synchronous>, transform_indices = @transform_10, window_bounds = array<i64: 1, 8>}, {transform_indices = @transform_11, window_bounds = array<i64: 2, 7>}, {transform_indices = @transform_12, window_bounds = array<i64: 2, 1>}]} {
    %c0 = arith.constant 0 : index
    %c0_0 = arith.constant 0 : index
    %0 = vector.load %arg1[%c0, %c0_0] : memref<2x147xf32, #tpu.memory_space<vmem>>, vector<2x147xf32>
    %1 = arith.truncf %0 : vector<2x147xf32> to vector<2x147xbf16>
    %c0_1 = arith.constant 0 : index
    %c0_2 = arith.constant 0 : index
    %2 = vector.load %arg2[%c0_1, %c0_2] : memref<147x512xbf16, #tpu.memory_space<vmem>>, vector<147x512xbf16>
    %cst = arith.constant dense<0.000000e+00> : vector<2x512xf32>
    %3 = tpu.matmul %1, %2, %cst {dimension_numbers = #tpu.dot_dimension_numbers<[1], [0], [0], [1], [0, 0, 1, 1], [], []>} : vector<2x147xbf16>, vector<147x512xbf16>, vector<2x512xf32> -> vector<2x512xf32>
    %c0_3 = arith.constant 0 : index
    %c0_4 = arith.constant 0 : index
    %4 = vector.load %arg3[%c0_3, %c0_4] : memref<1x512xf32, #tpu.memory_space<vmem>>, vector<1x512xf32>
    %5 = vector.broadcast %4 : vector<1x512xf32> to vector<2x512xf32>
    %6 = arith.addf %3, %5 : vector<2x512xf32>
    %cst_5 = arith.constant 0.000000e+00 : f32
    %7 = vector.broadcast %cst_5 : f32 to vector<2x512xf32>
    %8 = arith.cmpf ogt, %6, %7 : vector<2x512xf32>
    %cst_6 = arith.constant 0.000000e+00 : f32
    %9 = vector.broadcast %cst_6 : f32 to vector<2x512xf32>
    %10 = arith.minimumf %6, %9 : vector<2x512xf32>
    %11 = math.exp %10 : vector<2x512xf32>
    %cst_7 = arith.constant 1.000000e+00 : f32
    %12 = vector.broadcast %cst_7 : f32 to vector<2x512xf32>
    %13 = arith.subf %11, %12 : vector<2x512xf32>
    %14 = arith.select %8, %6, %13 : vector<2x512xi1>, vector<2x512xf32>
    %15 = arith.truncf %14 : vector<2x512xf32> to vector<2x512xbf16>
    %c0_8 = arith.constant 0 : index
    %c0_9 = arith.constant 0 : index
    %16 = vector.load %arg4[%c0_8, %c0_9] : memref<512x128xbf16, #tpu.memory_space<vmem>>, vector<512x128xbf16>
    %cst_10 = arith.constant dense<0.000000e+00> : vector<2x128xf32>
    %17 = tpu.matmul %15, %16, %cst_10 {dimension_numbers = #tpu.dot_dimension_numbers<[1], [0], [0], [1], [0, 0, 1, 1], [], []>} : vector<2x512xbf16>, vector<512x128xbf16>, vector<2x128xf32> -> vector<2x128xf32>
    %c0_11 = arith.constant 0 : index
    %c0_12 = arith.constant 0 : index
    %18 = vector.load %arg5[%c0_11, %c0_12] : memref<1x128xf32, #tpu.memory_space<vmem>>, vector<1x128xf32>
    %19 = vector.broadcast %18 : vector<1x128xf32> to vector<2x128xf32>
    %20 = arith.addf %17, %19 : vector<2x128xf32>
    %cst_13 = arith.constant 0.000000e+00 : f32
    %21 = vector.broadcast %cst_13 : f32 to vector<2x128xf32>
    %22 = arith.cmpf ogt, %20, %21 : vector<2x128xf32>
    %cst_14 = arith.constant 0.000000e+00 : f32
    %23 = vector.broadcast %cst_14 : f32 to vector<2x128xf32>
    %24 = arith.minimumf %20, %23 : vector<2x128xf32>
    %25 = math.exp %24 : vector<2x128xf32>
    %cst_15 = arith.constant 1.000000e+00 : f32
    %26 = vector.broadcast %cst_15 : f32 to vector<2x128xf32>
    %27 = arith.subf %25, %26 : vector<2x128xf32>
    %28 = arith.select %22, %20, %27 : vector<2x128xi1>, vector<2x128xf32>
    %29 = arith.truncf %28 : vector<2x128xf32> to vector<2x128xbf16>
    %c0_16 = arith.constant 0 : index
    %c0_17 = arith.constant 0 : index
    %30 = vector.load %arg6[%c0_16, %c0_17] : memref<128x32xbf16, #tpu.memory_space<vmem>>, vector<128x32xbf16>
    %cst_18 = arith.constant dense<0.000000e+00> : vector<2x32xf32>
    %31 = tpu.matmul %29, %30, %cst_18 {dimension_numbers = #tpu.dot_dimension_numbers<[1], [0], [0], [1], [0, 0, 1, 1], [], []>} : vector<2x128xbf16>, vector<128x32xbf16>, vector<2x32xf32> -> vector<2x32xf32>
    %c0_19 = arith.constant 0 : index
    %c0_20 = arith.constant 0 : index
    %32 = vector.load %arg7[%c0_19, %c0_20] : memref<1x32xf32, #tpu.memory_space<vmem>>, vector<1x32xf32>
    %33 = vector.broadcast %32 : vector<1x32xf32> to vector<2x32xf32>
    %34 = arith.addf %31, %33 : vector<2x32xf32>
    %cst_21 = arith.constant 0.000000e+00 : f32
    %35 = vector.broadcast %cst_21 : f32 to vector<2x32xf32>
    %36 = arith.cmpf ogt, %34, %35 : vector<2x32xf32>
    %cst_22 = arith.constant 0.000000e+00 : f32
    %37 = vector.broadcast %cst_22 : f32 to vector<2x32xf32>
    %38 = arith.minimumf %34, %37 : vector<2x32xf32>
    %39 = math.exp %38 : vector<2x32xf32>
    %cst_23 = arith.constant 1.000000e+00 : f32
    %40 = vector.broadcast %cst_23 : f32 to vector<2x32xf32>
    %41 = arith.subf %39, %40 : vector<2x32xf32>
    %42 = arith.select %36, %34, %41 : vector<2x32xi1>, vector<2x32xf32>
    %43 = arith.truncf %42 : vector<2x32xf32> to vector<2x32xbf16>
    %c0_24 = arith.constant 0 : index
    %c0_25 = arith.constant 0 : index
    %44 = vector.load %arg8[%c0_24, %c0_25] : memref<32x256xbf16, #tpu.memory_space<vmem>>, vector<32x256xbf16>
    %cst_26 = arith.constant dense<0.000000e+00> : vector<2x256xf32>
    %45 = tpu.matmul %43, %44, %cst_26 {dimension_numbers = #tpu.dot_dimension_numbers<[1], [0], [0], [1], [0, 0, 1, 1], [], []>} : vector<2x32xbf16>, vector<32x256xbf16>, vector<2x256xf32> -> vector<2x256xf32>
    %c0_27 = arith.constant 0 : index
    %c0_28 = arith.constant 0 : index
    %46 = vector.load %arg9[%c0_27, %c0_28] : memref<1x256xf32, #tpu.memory_space<vmem>>, vector<1x256xf32>
    %47 = vector.broadcast %46 : vector<1x256xf32> to vector<2x256xf32>
    %48 = arith.addf %45, %47 : vector<2x256xf32>
    %cst_29 = arith.constant 0.000000e+00 : f32
    %49 = vector.broadcast %cst_29 : f32 to vector<2x256xf32>
    %50 = arith.maximumf %48, %49 : vector<2x256xf32>
    %51 = arith.truncf %50 : vector<2x256xf32> to vector<2x256xbf16>
    %c0_30 = arith.constant 0 : index
    %c0_31 = arith.constant 0 : index
    %52 = vector.load %arg10[%c0_30, %c0_31] : memref<256x8xbf16, #tpu.memory_space<vmem>>, vector<256x8xbf16>
    %cst_32 = arith.constant dense<0.000000e+00> : vector<2x8xf32>
    %53 = tpu.matmul %51, %52, %cst_32 {dimension_numbers = #tpu.dot_dimension_numbers<[1], [0], [0], [1], [0, 0, 1, 1], [], []>} : vector<2x256xbf16>, vector<256x8xbf16>, vector<2x8xf32> -> vector<2x8xf32>
    %c0_33 = arith.constant 0 : index
    %c0_34 = arith.constant 0 : index
    %54 = vector.load %arg11[%c0_33, %c0_34] : memref<1x8xf32, #tpu.memory_space<vmem>>, vector<1x8xf32>
    %55 = vector.broadcast %54 : vector<1x8xf32> to vector<2x8xf32>
    %56 = arith.addf %53, %55 : vector<2x8xf32>
    %57 = vector.extract_strided_slice %56 {offsets = [0, 0], sizes = [2, 7], strides = [1, 1]} : vector<2x8xf32> to vector<2x7xf32>
    %cst_35 = arith.constant dense<0xFF800000> : vector<2xf32>
    %58 = vector.multi_reduction <maximumf>, %57, %cst_35 [1] : vector<2x7xf32> to vector<2xf32>
    %59 = vector.shape_cast %58 : vector<2xf32> to vector<2x1xf32>
    %60 = vector.broadcast %59 : vector<2x1xf32> to vector<2x7xf32>
    %61 = arith.subf %57, %60 : vector<2x7xf32>
    %62 = math.exp %61 : vector<2x7xf32>
    %cst_36 = arith.constant dense<0.000000e+00> : vector<2xf32>
    %63 = vector.multi_reduction <add>, %62, %cst_36 [1] : vector<2x7xf32> to vector<2xf32>
    %64 = vector.shape_cast %63 : vector<2xf32> to vector<2x1xf32>
    %65 = math.log %64 : vector<2x1xf32>
    %66 = arith.addf %59, %65 : vector<2x1xf32>
    %67 = vector.broadcast %66 : vector<2x1xf32> to vector<2x7xf32>
    %68 = arith.subf %57, %67 : vector<2x7xf32>
    %c0_37 = arith.constant 0 : index
    %c0_38 = arith.constant 0 : index
    %69 = vector.load %arg12[%c0_37, %c0_38] : memref<2x7xf32, #tpu.memory_space<vmem>>, vector<2x7xf32>
    tpu.vector_store %arg12[%c0_37, %c0_38], %68 {strides = array<i32>} : memref<2x7xf32, #tpu.memory_space<vmem>>, vector<2x7xf32>,
    %70 = vector.extract_strided_slice %56 {offsets = [0, 7], sizes = [2, 1], strides = [1, 1]} : vector<2x8xf32> to vector<2x1xf32>
    %c0_39 = arith.constant 0 : index
    %c0_40 = arith.constant 0 : index
    %71 = vector.load %arg13[%c0_39, %c0_40] : memref<2x1xf32, #tpu.memory_space<vmem>>, vector<2x1xf32>
    tpu.vector_store %arg13[%c0_39, %c0_40], %70 {strides = array<i32>} : memref<2x1xf32, #tpu.memory_space<vmem>>, vector<2x1xf32>,
    return
  }
  func.func @transform_0(%arg0: i32) -> (i32, i32) {
    %c0_i32 = arith.constant 0 : i32
    %c0_i32_0 = arith.constant 0 : i32
    return %arg0, %c0_i32 : i32, i32
  }
  func.func @transform_1(%arg0: i32) -> (i32, i32) {
    %c0_i32 = arith.constant 0 : i32
    %c0_i32_0 = arith.constant 0 : i32
    %c0_i32_1 = arith.constant 0 : i32
    return %c0_i32, %c0_i32_0 : i32, i32
  }
  func.func @transform_2(%arg0: i32) -> (i32, i32) {
    %c0_i32 = arith.constant 0 : i32
    %c0_i32_0 = arith.constant 0 : i32
    %c0_i32_1 = arith.constant 0 : i32
    return %c0_i32, %c0_i32_0 : i32, i32
  }
  func.func @transform_3(%arg0: i32) -> (i32, i32) {
    %c0_i32 = arith.constant 0 : i32
    %c0_i32_0 = arith.constant 0 : i32
    %c0_i32_1 = arith.constant 0 : i32
    return %c0_i32, %c0_i32_0 : i32, i32
  }
  func.func @transform_4(%arg0: i32) -> (i32, i32) {
    %c0_i32 = arith.constant 0 : i32
    %c0_i32_0 = arith.constant 0 : i32
    %c0_i32_1 = arith.constant 0 : i32
    return %c0_i32, %c0_i32_0 : i32, i32
  }
  func.func @transform_5(%arg0: i32) -> (i32, i32) {
    %c0_i32 = arith.constant 0 : i32
    %c0_i32_0 = arith.constant 0 : i32
    %c0_i32_1 = arith.constant 0 : i32
    return %c0_i32, %c0_i32_0 : i32, i32
  }
  func.func @transform_6(%arg0: i32) -> (i32, i32) {
    %c0_i32 = arith.constant 0 : i32
    %c0_i32_0 = arith.constant 0 : i32
    %c0_i32_1 = arith.constant 0 : i32
    return %c0_i32, %c0_i32_0 : i32, i32
  }
  func.func @transform_7(%arg0: i32) -> (i32, i32) {
    %c0_i32 = arith.constant 0 : i32
    %c0_i32_0 = arith.constant 0 : i32
    %c0_i32_1 = arith.constant 0 : i32
    return %c0_i32, %c0_i32_0 : i32, i32
  }
  func.func @transform_8(%arg0: i32) -> (i32, i32) {
    %c0_i32 = arith.constant 0 : i32
    %c0_i32_0 = arith.constant 0 : i32
    %c0_i32_1 = arith.constant 0 : i32
    return %c0_i32, %c0_i32_0 : i32, i32
  }
  func.func @transform_9(%arg0: i32) -> (i32, i32) {
    %c0_i32 = arith.constant 0 : i32
    %c0_i32_0 = arith.constant 0 : i32
    %c0_i32_1 = arith.constant 0 : i32
    return %c0_i32, %c0_i32_0 : i32, i32
  }
  func.func @transform_10(%arg0: i32) -> (i32, i32) {
    %c0_i32 = arith.constant 0 : i32
    %c0_i32_0 = arith.constant 0 : i32
    %c0_i32_1 = arith.constant 0 : i32
    return %c0_i32, %c0_i32_0 : i32, i32
  }
  func.func @transform_11(%arg0: i32) -> (i32, i32) {
    %c0_i32 = arith.constant 0 : i32
    %c0_i32_0 = arith.constant 0 : i32
    return %arg0, %c0_i32 : i32, i32
  }
  func.func @transform_12(%arg0: i32) -> (i32, i32) {
    %c0_i32 = arith.constant 0 : i32
    %c0_i32_0 = arith.constant 0 : i32
    return %arg0, %c0_i32 : i32, i32
  }
}

</mosaic_0001>

<bundles_post_ra>
// kernel: acmodel_forward.1
= control target key start
LH: loop header
LB: loop body
LE: loop exit
PB: predicated region body
PF: predicated region fallthrough
CT: control target
= control target key end

     0   :  { %18 = vsyncpa [#allocation3], 0  ;;  %s1965_s0 = inlined_call_operand.vmem [shape: f32[2,147], index: 0, kind: input, shape index: {}]   ;;  %s1966_s1 = inlined_call_operand.vmem [shape: bf16[147,512], index: 1, kind: input, shape index: {}]   ;;  %s1967_s2 = inlined_call_operand.vmem [shape: f32[1,512], index: 2, kind: input, shape index: {}]   ;;  %s1968_s3 = inlined_call_operand.hbm [shape: bf16[512,128], index: 3, kind: input, shape index: {}]   ;;  %s1969_s4 = inlined_call_operand.vmem [shape: f32[1,128], index: 4, kind: input, shape index: {}]   ;;  %s1970_s5 = inlined_call_operand.vmem [shape: bf16[128,32], index: 5, kind: input, shape index: {}]   ;;  %s1971_s6 = inlined_call_operand.vmem [shape: f32[1,32], index: 6, kind: input, shape index: {}]   ;;  %s1972_s7 = inlined_call_operand.vmem [shape: bf16[32,256], index: 7, kind: input, shape index: {}]   ;;  %s1973_s8 = inlined_call_operand.vmem [shape: f32[1,256], index: 8, kind: input, shape index: {}]   ;;  %s1974_s9 = inlined_call_operand.vmem [shape: bf16[256,8], index: 9, kind: input, shape index: {}]   ;;  %s1975_s10 = inlined_call_operand.vmem [shape: f32[1,8], index: 10, kind: input, shape index: {}]   ;;  %s1976_s11 = inlined_call_operand.hbm [shape: f32[2,7], index: 11, kind: output, shape index: {0}]   ;;  %s1977_s12 = inlined_call_operand.vmem [shape: f32[2,1], index: 12, kind: output, shape index: {1}]  }
   0x1   :  { %19 = vsyncpa [#allocation4], 0  ;;  %s1619_s21 = smov [#allocation2]   ;;  %s1571_s25 = scalar_lea.hbm %s1968_s3, 4096 }
   0x2   :  { %s31_s22 = sshll.u32 %s1619_s21, 4  ;;  %p1572_p0 = scmp.ne.s32.totalorder %s1968_s3, %s1571_s25  ;;  %s32_s22 = int_to_ptr.vmem [resolvable:$true] %s31_s22 }
   0x3   :  { %p1575_p1 = scmp.lt.u32.totalorder %s1571_s25, %s1968_s3 }
   0x5   :  { %p1577_p2 = pnand %p1575_p1, %p1572_p0 }
   0x7   :  { %1580 = shalt.err (!%p1577_p2)
}
   0x8   :  { %s1581_s30 = scalar_lea.vmem %s32_s22, 4096  ;;  %p1586_p4 = scmp.lt.s32.totalorder %s32_s22, %s32_s22 }
   0x9   :  { %p1582_p3 = scmp.ne.s32.totalorder %s32_s22, %s1581_s30  ;;  %p1587_p5 = scmp.lt.s32.totalorder %s1581_s30, %s1581_s30 }
   0xb   :  { %p1588_p6 = por %p1587_p5, %p1586_p4 }
   0xd   :  { %p1589_p7 = pnand %p1588_p6, %p1582_p3 }
   0xf   :  { %1592 = shalt.err (!%p1589_p7)
}
  0x10   :  { %s1620_s13 = smov 64   ;;  %s1621_s14 = smov 4  }
  0x11   :  { %37 = dma.hbm_to_vmem [thread:$0]  %s1968_s3, 4096, %s32_s22, [#allocation3], %s1620_s13, %s1620_s13, %s1621_s14  }
  0x12   :  { %1615 = dma.done.wait [#allocation3], 4096  }
  0x13   :  { %1616 = vsyncadd [#allocation3], 4294963200  ;;  %v1435_v0 = vld [vmem:[%s1966_s1 + $0x4] ss:$16 sps:$4 sm:$0xff]   ;;  %v1437_v1 = vld [vmem:[%s1966_s1 + $0xc] ss:$16 sps:$4 sm:$0xff]  }
  0x14   :  { %340 = vmatprep.subr.bf16.mxu0 %v1435_v0  ;;  %v1439_v2 = vld [vmem:[%s1966_s1] ss:$16 sps:$4 sm:$0xff]   ;;  %v1440_v3 = vld [vmem:[%s1966_s1 + $0x8] ss:$16 sps:$4 sm:$0xff]   ;;  %381 = vmatprep.subr.bf16.mxu1 %v1437_v1  ;;  %v1441_v4 = vld [vmem:[%s1966_s1 + $0x24] ss:$16 sps:$4 sm:$0xff]  }
  0x15   :  { %341 = vmatpush1.bf16.msra.mxu0 %v1439_v2  ;;  %382 = vmatpush1.bf16.msra.mxu1 %v1440_v3  ;;  %v1443_v5 = vld [vmem:[%s1966_s1 + $0x2c] ss:$16 sps:$4 sm:$0xff]   ;;  %v1445_v6 = vld [vmem:[%s1966_s1 + $0x20] ss:$16 sps:$4 sm:$0xff]   ;;  %v1446_v7 = vld [vmem:[%s1966_s1 + $0x28] ss:$16 sps:$4 sm:$0xff]  }
  0x16   :  { %342 = vmatprep.subr.bf16.mxu0 %v1441_v4  ;;  %383 = vmatprep.subr.bf16.mxu1 %v1443_v5  ;;  %v1447_v8 = vld [vmem:[%s1966_s1 + $0x44] ss:$16 sps:$4 sm:$0xff]   ;;  %v1449_v9 = vld [vmem:[%s1966_s1 + $0x4c] ss:$16 sps:$4 sm:$0xff]   ;;  %v1451_v10 = vld [vmem:[%s1966_s1 + $0x40] ss:$16 sps:$4 sm:$0xff]  }
  0x17   :  { %v1452_v11 = vld [vmem:[%s1966_s1 + $0x48] ss:$16 sps:$4 sm:$0xff]   ;;  %v1453_v12 = vld [vmem:[%s1966_s1 + $0x64] ss:$16 sps:$4 sm:$0xff]   ;;  %v1455_v13 = vld [vmem:[%s1966_s1 + $0x6c] ss:$16 sps:$4 sm:$0xff]  }
  0x18   :  { %v1457_v14 = vld [vmem:[%s1966_s1 + $0x60] ss:$16 sps:$4 sm:$0xff]   ;;  %v1458_v15 = vld [vmem:[%s1966_s1 + $0x68] ss:$16 sps:$4 sm:$0xff]   ;;  %v1459_v16 = vld [vmem:[%s1966_s1 + $0x84] ss:$16 sps:$4 sm:$0xff]  }
  0x19   :  { %343 = vmatpush1.bf16.msra.mxu0 %v1445_v6  ;;  %384 = vmatpush1.bf16.msra.mxu1 %v1446_v7  ;;  %v1461_v17 = vld [vmem:[%s1966_s1 + $0x8c] ss:$16 sps:$4 sm:$0xff]   ;;  %v1463_v18 = vld [vmem:[%s1966_s1 + $0x80] ss:$16 sps:$4 sm:$0xff]   ;;  %v1464_v19 = vld [vmem:[%s1966_s1 + $0x88] ss:$16 sps:$4 sm:$0xff]  }
  0x1a   :  { %344 = vmatprep.subr.bf16.mxu0 %v1447_v8  ;;  %385 = vmatprep.subr.bf16.mxu1 %v1449_v9  ;;  %v1465_v20 = vld [vmem:[%s1966_s1 + $0xa4] ss:$16 sps:$4 sm:$0xff]   ;;  %v1467_v21 = vld [vmem:[%s1966_s1 + $0xac] ss:$16 sps:$4 sm:$0xff]   ;;  %v1469_v22 = vld [vmem:[%s1966_s1 + $0xa0] ss:$16 sps:$4 sm:$0xff]  }
  0x1b   :  { %vm324_vm0 = vcmask 1040384   ;;  %v1470_v23 = vld [vmem:[%s1966_s1 + $0xa8] ss:$16 sps:$4 sm:$0xff]   ;;  %v1471_v24 = vld [vmem:[%s1966_s1 + $0xc4] ss:$16 sps:$4 sm:$0xff]   ;;  %vm325_vm1 = vcmask 1041408  }
  0x1c   :  { %v1473_v25 = vld [vmem:[%s1966_s1 + $0xcc] ss:$16 sps:$4 sm:$0xff]   ;;  %v1622_v26 = vmov 65535   ;;  %vm320_vm2 = vcmask 154624   ;;  %v1475_v28 = vld [vmem:[%s1966_s1 + $0xc0] ss:$16 sps:$4 sm:$0xff]  }
  0x1d   :  { %345 = vmatpush1.bf16.msra.mxu0 %v1451_v10  ;;  %386 = vmatpush1.bf16.msra.mxu1 %v1452_v11  ;;  %v326_v27 = vsel %vm324_vm0, 4294967295, %v1622_v26  ;;  %v1476_v29 = vld [vmem:[%s1966_s1 + $0xc8] ss:$16 sps:$4 sm:$0xff]   ;;  %v1477_v30 = vld [vmem:[%s1966_s1 + $0xe4] ss:$16 sps:$4 sm:$0xff]   ;;  %vm1624_vm7 = vmmov 0  }
  0x1e   :  { %346 = vmatprep.subr.bf16.mxu0 %v1453_v12  ;;  %387 = vmatprep.subr.bf16.mxu1 %v1455_v13  ;;  %v1479_v31 = vld [vmem:[%s1966_s1 + $0xec] ss:$16 sps:$4 sm:$0xff]   ;;  %v106_v32 = vld [vmem:[%s1966_s1 + $0x120] sm:$0x33]  ;;  %v1482_v37 = vld [vmem:[%s1966_s1 + $0xe8] ss:$16 sps:$4 sm:$0xff]  }
  0x1f   :  { %v1218_v33 = vld.sshfl [vmem:[%s1965_s0] sm:$0x33 pattern:$0x76325410]  ;;  %v107_v35 = vld [vmem:[%s1966_s1 + $0x128] sm:$0x33]  ;;  %v1256_v41 = vcombine.high %v106_v32, %v106_v32  ;;  %v1255_v46 = vcombine.low %v106_v32, %v106_v32 }
  0x20   :  { %v1481_v34 = vld [vmem:[%s1966_s1 + $0xe0] ss:$16 sps:$4 sm:$0xff]   ;;  %v65_v36 = vcombine.high %v1218_v33, %v1218_v33  ;;  %v1483_v38 = vld [vmem:[%s1966_s1 + $0x104] ss:$16 sps:$4 sm:$0xff]   ;;  %v1485_v40 = vld [vmem:[%s1966_s1 + $0x10c] ss:$16 sps:$4 sm:$0xff]   ;;  %v1258_v42 = vcombine.high %v107_v35, %v107_v35  ;;  %v1257_v47 = vcombine.low %v107_v35, %v107_v35  ;;  %v68_v56 = vpack.c.bf16 %v1218_v33, %v1218_v33 }
  0x21   :  { %347 = vmatpush1.bf16.msra.mxu0 %v1457_v14  ;;  %388 = vmatpush1.bf16.msra.mxu1 %v1458_v15  ;;  %v327_v43 = vsel %vm325_vm1, %v326_v27, 0  ;;  %v1487_v44 = vld [vmem:[%s1966_s1 + $0x100] ss:$16 sps:$4 sm:$0xff]   ;;  %v1488_v45 = vld [vmem:[%s1966_s1 + $0x108] ss:$16 sps:$4 sm:$0xff]   ;;  %vm954_vm10 = vcmask 261120  }
  0x22   :  { %348 = vmatprep.subr.bf16.mxu0 %v1459_v16  ;;  %389 = vmatprep.subr.bf16.mxu1 %v1461_v17  ;;  %v69_v39 = vpack.c.bf16 %v65_v36, %v65_v36  ;;  %v332_v48 = vand.u32 %v1256_v41, %v327_v43  ;;  %v338_v49 = vand.u32 %v1258_v42, %v327_v43  ;;  %v1493_v50 = vld [vmem:[#allocation2 + $0x40] sm:$0xff]   ;;  %v1497_v57 = vld [vmem:[#allocation2 + $0x48] sm:$0xff]   ;;  %v1501_v61 = vld [vmem:[#allocation2 + $0x50] sm:$0xff]   ;;  %vm1178_vm11 = vcmask 50176   ;;  %s1626_s27 = smov 121  }
  0x23   :  { %v1494_v51 = vld [vmem:[#allocation2 + $0xc0] sm:$0xff]   ;;  %v329_v52 = vand.u32 %v1255_v46, %v327_v43  ;;  %v335_v53 = vand.u32 %v1257_v47, %v327_v43  ;;  %v1498_v58 = vld [vmem:[#allocation2 + $0xc8] sm:$0xff]   ;;  %v1502_v62 = vld [vmem:[#allocation2 + $0xd0] sm:$0xff]   ;;  %vm1197_vm12 = vcmask 1024  }
  0x24   :  { %1259 = vmatprep.mubr.msk.bf16.mxu0 %vm320_vm2, %v69_v39  ;;  %1260 = vmatprep.mubr.msk.bf16.mxu1 %vm320_vm2, %v69_v39  ;;  %v1495_v54 = vld [vmem:[#allocation2] sm:$0xff]   ;;  %v1499_v59 = vld [vmem:[#allocation2 + $0x8] sm:$0xff]   ;;  %v1503_v63 = vld [vmem:[#allocation2 + $0x10] sm:$0xff]  }
  0x25   :  { %349 = vmatpush1.bf16.msra.mxu0 %v1463_v18  ;;  %390 = vmatpush1.bf16.msra.mxu1 %v1464_v19  ;;  %v1496_v55 = vld [vmem:[#allocation2 + $0x80] sm:$0xff]   ;;  %v1500_v60 = vld [vmem:[#allocation2 + $0x88] sm:$0xff]   ;;  %v1504_v0 = vld [vmem:[#allocation2 + $0x90] sm:$0xff]  }
  0x26   :  { %350 = vmatprep.subr.bf16.mxu0 %v1465_v20  ;;  %391 = vmatprep.subr.bf16.mxu1 %v1467_v21  ;;  %v1505_v1 = vld [vmem:[#allocation2 + $0x58] sm:$0xff]   ;;  %v1509_v5 = vld [vmem:[#allocation2 + $0x60] sm:$0xff]   ;;  %v1513_v9 = vld [vmem:[#allocation2 + $0x68] sm:$0xff]   ;;  %v1623_v21 = vmov 0.0  }
  0x27   :  { %v1506_v2 = vld [vmem:[#allocation2 + $0xd8] sm:$0xff]   ;;  %v1510_v6 = vld [vmem:[#allocation2 + $0xe0] sm:$0xff]   ;;  %v1514_v10 = vld [vmem:[#allocation2 + $0xe8] sm:$0xff]  }
  0x28   :  { %v1507_v3 = vld [vmem:[#allocation2 + $0x18] sm:$0xff]   ;;  %v1511_v7 = vld [vmem:[#allocation2 + $0x20] sm:$0xff]   ;;  %v1515_v11 = vld [vmem:[#allocation2 + $0x28] sm:$0xff]  }
  0x29   :  { %351 = vmatpush1.bf16.msra.mxu0 %v1469_v22  ;;  %392 = vmatpush1.bf16.msra.mxu1 %v1470_v23  ;;  %v1508_v4 = vld [vmem:[#allocation2 + $0x98] sm:$0xff]   ;;  %v1512_v8 = vld [vmem:[#allocation2 + $0xa0] sm:$0xff]   ;;  %v1516_v12 = vld [vmem:[#allocation2 + $0xa8] sm:$0xff]   ;;  %v110_v22 = vlaneseq }
  0x2a   :  { %352 = vmatprep.subr.bf16.mxu0 %v1471_v24  ;;  %393 = vmatprep.subr.bf16.mxu1 %v1473_v25  ;;  %v1517_v13 = vld [vmem:[#allocation2 + $0x70] sm:$0xff]   ;;  %v1521_v17 = vld [vmem:[#allocation2 + $0x78] sm:$0xff]   ;;  %v108_v26 = vld [vmem:[%s1967_s2] sm:$0xf] }
  0x2b   :  { %v1518_v14 = vld [vmem:[#allocation2 + $0xf0] sm:$0xff]   ;;  %v1522_v18 = vld [vmem:[#allocation2 + $0xf8] sm:$0xff]   ;;  %v1826_v23 = vshrl.u32 %v110_v22, 7 }
  0x2c   :  { %v1519_v15 = vld [vmem:[#allocation2 + $0x30] sm:$0xff]   ;;  %v1523_v19 = vld [vmem:[#allocation2 + $0x38] sm:$0xff]  }
  0x2d   :  { %353 = vmatpush1.bf16.msra.mxu0 %v1475_v28  ;;  %394 = vmatpush1.bf16.msra.mxu1 %v1476_v29  ;;  %v1520_v16 = vld [vmem:[#allocation2 + $0xb0] sm:$0xff]   ;;  %v1524_v20 = vld [vmem:[#allocation2 + $0xb8] sm:$0xff]   ;;  %v112_v24 = vsub.s32 0, %v1826_v23  ;;  %v120_v25 = vsub.s32 2, %v1826_v23  ;;  %v116_v27 = vsub.s32 1, %v1826_v23  ;;  %v124_v28 = vsub.s32 3, %v1826_v23 }
  0x2e   :  { %354 = vmatprep.subr.bf16.mxu0 %v1477_v30  ;;  %395 = vmatprep.subr.bf16.mxu1 %v1479_v31 }
  0x2f   :  { %v113_v29 = vrot.slane %v108_v26, %v112_v24  ;;  %v121_v30 = vrot.slane %v108_v26, %v120_v25  ;;  %v117_v31 = vrot.slane %v108_v26, %v116_v27  ;;  %v125_v32 = vrot.slane %v108_v26, %v124_v28 }
  0x31   :  { %355 = vmatpush1.bf16.msra.mxu0 %v1481_v34  ;;  %396 = vmatpush1.bf16.msra.mxu1 %v1482_v37 }
  0x32   :  { %356 = vmatprep.subr.bf16.mxu0 %v1483_v38  ;;  %397 = vmatprep.subr.bf16.mxu1 %v1485_v40 }
  0x35   :  { %357 = vmatpush1.bf16.msra.mxu0 %v1487_v44  ;;  %398 = vmatpush1.bf16.msra.mxu1 %v1488_v45 }
  0x36   :  { %358 = vmatprep.subr.bf16.mxu0 %v332_v48  ;;  %399 = vmatprep.subr.bf16.mxu1 %v338_v49 }
  0x39   :  { %359 = vmatpush1.bf16.msra.mxu0 %v329_v52  ;;  %400 = vmatpush1.bf16.msra.mxu1 %v335_v53 }
  0x3a   :  { %1331 = vmatprep.subr.bf16.mxu0 %v1493_v50  ;;  %1353 = vmatprep.subr.bf16.mxu1 %v1494_v51 }
  0x3c   :  { %373 = vmatmul.mubr.bf16.vlgmr.msra.gmra.mrb[0].mxu0 %v68_v56  ;;  %414 = vmatmul.mubr.bf16.vlgmr.msra.gmra.mrb[0].mxu1 %v68_v56 }
  0x3d   :  { %1332 = vmatpush3.bf16.msra.mxu0 %v1495_v54  ;;  %1354 = vmatpush3.bf16.msra.mxu1 %v1496_v55 }
  0x3e   :  { %1333 = vmatprep.subr.bf16.mxu0 %v1497_v57  ;;  %1355 = vmatprep.subr.bf16.mxu1 %v1498_v58 }
  0x41   :  { %1334 = vmatpush3.bf16.msra.mxu0 %v1499_v59  ;;  %1356 = vmatpush3.bf16.msra.mxu1 %v1500_v60 }
  0x42   :  { %1335 = vmatprep.subr.bf16.mxu0 %v1501_v61  ;;  %1357 = vmatprep.subr.bf16.mxu1 %v1502_v62 }
  0x45   :  { %1336 = vmatpush3.bf16.msra.mxu0 %v1503_v63  ;;  %1358 = vmatpush3.bf16.msra.mxu1 %v1504_v0 }
  0x46   :  { %1337 = vmatprep.subr.bf16.mxu0 %v1505_v1  ;;  %1359 = vmatprep.subr.bf16.mxu1 %v1506_v2  ;;  %v1525_v2 = vld [vmem:[%s1970_s5] sm:$0xff]  }
  0x49   :  { %1338 = vmatpush3.bf16.msra.mxu0 %v1507_v3  ;;  %1360 = vmatpush3.bf16.msra.mxu1 %v1508_v4 }
  0x4a   :  { %1339 = vmatprep.subr.bf16.mxu0 %v1509_v5  ;;  %1361 = vmatprep.subr.bf16.mxu1 %v1510_v6  ;;  %v1526_v6 = vld [vmem:[%s1970_s5 + $0x8] sm:$0xff]  }
  0x4d   :  { %1340 = vmatpush3.bf16.msra.mxu0 %v1511_v7  ;;  %1362 = vmatpush3.bf16.msra.mxu1 %v1512_v8  ;;  %v1527_v7 = vld [vmem:[%s1970_s5 + $0x10] sm:$0xff]   ;;  %v1528_v8 = vld [vmem:[%s1970_s5 + $0x18] sm:$0xff]  }
  0x4e   :  { %1341 = vmatprep.subr.bf16.mxu0 %v1513_v9  ;;  %1363 = vmatprep.subr.bf16.mxu1 %v1514_v10  ;;  %v1529_v9 = vld [vmem:[%s1970_s5 + $0x20] sm:$0xff]   ;;  %v1530_v10 = vld [vmem:[%s1970_s5 + $0x28] sm:$0xff]  }
  0x51   :  { %1342 = vmatpush3.bf16.msra.mxu0 %v1515_v11  ;;  %1364 = vmatpush3.bf16.msra.mxu1 %v1516_v12  ;;  %v1531_v11 = vld [vmem:[%s1970_s5 + $0x30] sm:$0xff]   ;;  %v1532_v12 = vld [vmem:[%s1970_s5 + $0x38] sm:$0xff]  }
  0x52   :  { %1343 = vmatprep.subr.bf16.mxu0 %v1517_v13  ;;  %1365 = vmatprep.subr.bf16.mxu1 %v1518_v14 }
  0x55   :  { %1344 = vmatpush3.bf16.msra.mxu0 %v1519_v15  ;;  %1366 = vmatpush3.bf16.msra.mxu1 %v1520_v16  ;;  %v1265_v15 = vld [vmem:[%s1969_s4] ss:$0 sm:$0xff] }
  0x56   :  { %1345 = vmatprep.subr.bf16.mxu0 %v1521_v17  ;;  %1367 = vmatprep.subr.bf16.mxu1 %v1522_v18 }
  0x59   :  { %1346 = vmatpush3.bf16.msra.mxu0 %v1523_v19  ;;  %1368 = vmatpush3.bf16.msra.mxu1 %v1524_v20 }
  0x5a   :  { %1406 = vmatprep.subr.bf16.mxu0 %v1623_v21 }
 0x10f   :  { %v374_v33 = vpop.f32.mrb[0].mxu0  ;;  %v415_v34 = vpop.f32.mrb[0].mxu1 }
 0x110   :  { %v375_v35 = vadd.f32 %v374_v33, %v113_v29  ;;  %v416_v36 = vadd.f32 %v415_v34, %v121_v30  ;;  %v376_v37 = vpop.f32.mrb[1].mxu0  ;;  %v417_v38 = vpop.f32.mrb[1].mxu1 }
 0x111   :  { %v377_v39 = vadd.f32 %v376_v37, %v117_v31  ;;  %v418_v40 = vadd.f32 %v417_v38, %v125_v32  ;;  %v378_v41 = vpop.f32.mrb[2].mxu0  ;;  %v419_v42 = vpop.f32.mrb[2].mxu1  ;;  %v1538_v37 = vld [vmem:[%s1972_s7 + $0x14] ss:$8 sps:$4 sm:$0xff]   ;;  %v1536_v38 = vld [vmem:[%s1972_s7 + $0x10] ss:$8 sps:$4 sm:$0xff]  }
 0x112   :  { %v426_v43 = vmin.f32 %v375_v35, 0.0  ;;  %v428_v44 = vmin.f32 %v416_v36, 0.0  ;;  %v379_v45 = vpop.f32.mrb[3].mxu0  ;;  %v420_v46 = vpop.f32.mrb[3].mxu1  ;;  %vm422_vm3 = vcmp.gt.f32.partialorder %v375_v35, 0.0  ;;  %vm424_vm4 = vcmp.gt.f32.partialorder %v416_v36, 0.0 }
 0x113   :  { %v427_v47 = vmin.f32 %v377_v39, 0.0  ;;  %v429_v48 = vmin.f32 %v418_v40, 0.0  ;;  %vm423_vm5 = vcmp.gt.f32.partialorder %v377_v39, 0.0  ;;  %vm425_vm6 = vcmp.gt.f32.partialorder %v418_v40, 0.0  ;;  %v1299_v41 = vld [vmem:[%s1971_s6] ss:$0 sm:$0xff] }
 0x114   :  { %v430_v49 = vmul.f32 1.442695, %v426_v43  ;;  %v434_v50 = vmul.f32 1.442695, %v428_v44 }
 0x115   :  { %v432_v51 = vmul.f32 1.442695, %v427_v47  ;;  %v436_v52 = vmul.f32 1.442695, %v429_v48 }
 0x116   :  { %1555 = vpow2.f32 %v430_v49 }
 0x117   :  { %1557 = vpow2.f32 %v434_v50 }
 0x118   :  { %1559 = vpow2.f32 %v432_v51 }
 0x119   :  { %1561 = vpow2.f32 %v436_v52  ;;  %v1540_v52 = vld [vmem:[%s1974_s9] sm:$0xff]  }
 0x120   :  { %v1556_v53 = vpop.eup %1555 }
 0x121   :  { %v1558_v54 = vpop.eup %1557  ;;  %v1261_v55 = vadd.f32 -1.0, %v1556_v53 }
 0x122   :  { %v1560_v56 = vpop.eup %1559  ;;  %v1263_v57 = vadd.f32 -1.0, %v1558_v54  ;;  %v1541_v54 = vld [vmem:[%s1974_s9 + $0x48] sm:$0xff]  }
 0x123   :  { %v1562_v58 = vpop.eup %1561  ;;  %v1262_v59 = vadd.f32 -1.0, %v1560_v56  ;;  %v442_v60 = vsel %vm422_vm3, %v375_v35, %v1261_v55  ;;  %v1535_v35 = vld [vmem:[%s1972_s7 + $0x4] ss:$8 sps:$4 sm:$0xff]   ;;  %v1543_v56 = vld [vmem:[%s1974_s9 + $0x50] sm:$0xff]  }
 0x124   :  { %v1264_v61 = vadd.f32 -1.0, %v1562_v58  ;;  %v444_v62 = vsel %vm424_vm4, %v416_v36, %v1263_v57  ;;  %v446_v3 = vpack.c.bf16 %v442_v60, %v442_v60  ;;  %v1533_v36 = vld [vmem:[%s1972_s7] ss:$8 sps:$4 sm:$0xff]   ;;  %958 = vmatprep.subr.bf16.mxu1 %v1535_v35  ;;  %v1544_v57 = vld [vmem:[%s1974_s9 + $0x10] sm:$0xff]   ;;  %v1545_v58 = vld [vmem:[%s1974_s9 + $0x58] sm:$0xff]  }
 0x125   :  { %v443_v63 = vsel %vm423_vm5, %v377_v39, %v1262_v59  ;;  %v448_v5 = vpack.c.bf16 %v444_v62, %v444_v62  ;;  %v1625_v39 = vmov 0   ;;  %v1542_v55 = vld [vmem:[%s1974_s9 + $0x8] sm:$0xff]   ;;  %v1546_v59 = vld [vmem:[%s1974_s9 + $0x18] sm:$0xff]   ;;  %v1547_v60 = vld [vmem:[%s1974_s9 + $0x60] sm:$0xff]  }
 0x126   :  { %v447_v0 = vpack.c.bf16 %v443_v63, %v443_v63  ;;  %v445_v1 = vsel %vm425_vm6, %v418_v40, %v1264_v61  ;;  %v1539_v40 = vld [vmem:[%s1974_s9 + $0x40] sm:$0xff]   ;;  %v1549_v62 = vld [vmem:[%s1974_s9 + $0x68] sm:$0xff]  }
 0x127   :  { %v449_v4 = vpack.c.bf16 %v445_v1, %v445_v1  ;;  %v1548_v61 = vld [vmem:[%s1974_s9 + $0x20] sm:$0xff]   ;;  %v1550_v63 = vld [vmem:[%s1974_s9 + $0x28] sm:$0xff]   ;;  %v1552_v1 = vld [vmem:[%s1974_s9 + $0x30] sm:$0xff]  }
 0x128   :  { %745 = vmatprep.mubr.bf16.mxu0 %v447_v0  ;;  %v1551_v0 = vld [vmem:[%s1974_s9 + $0x70] sm:$0xff]  }
 0x129   :  { %785 = vmatprep.mubr.bf16.mxu1 %v449_v4  ;;  %746 = vmatmul.mubr.bf16.vlgmr.msra.gmra.mrb[4].mxu0 %v446_v3  ;;  %v1554_v3 = vld [vmem:[%s1974_s9 + $0x38] sm:$0xff]   ;;  %v922_v4 = vld [vmem:[%s1973_s8] sm:$0x3] }
 0x12a   :  { %786 = vmatmul.mubr.bf16.vlgmr.msra.gmra.mrb[4].mxu1 %v448_v5  ;;  %1407 = vmatpush3.bf16.msra.mxu0 %v1525_v2  ;;  %v1553_v2 = vld [vmem:[%s1974_s9 + $0x78] sm:$0xff]   ;;  %v927_v5 = vrot.slane %v922_v4, %v112_v24  ;;  %v1314_v24 = vld [vmem:[%s1975_s10] ss:$0 sm:$0xff]  ;;  %s1627_s10 = smov [#allocation5]  }
 0x12b   :  { %1408 = vmatprep.subr.bf16.mxu0 %v1623_v21  ;;  %1422 = vmatprep.mubr.msk.bf16.mxu0 %vm1624_vm7, %v1623_v21  ;;  %s1205_s30 = sshll.u32 %s1627_s10, 4  ;;  %s1206_s30 = int_to_ptr.vmem [resolvable:$true] %s1205_s30 }
 0x12c   :  { %959 = vmatpush1.bf16.msra.mxu1 %v1533_v36  ;;  %990 = vmatprep.mubr.bf16.mxu1 %v1625_v39  ;;  %p1598_p9 = scmp.lt.s32.totalorder %s1206_s30, %s1206_s30 }
 0x12d   :  { %960 = vmatprep.subr.bf16.mxu1 %v1538_v37 }
 0x12e   :  { %1409 = vmatpush3.bf16.msra.mxu0 %v1526_v6  ;;  %v931_v6 = vrot.slane %v922_v4, %v116_v27 }
 0x12f   :  { %1410 = vmatprep.subr.bf16.mxu0 %v1623_v21 }
 0x130   :  { %961 = vmatpush1.bf16.msra.mxu1 %v1536_v38 }
 0x131   :  { %1384 = vmatprep.subr.bf16.mxu1 %v1539_v40 }
 0x132   :  { %1411 = vmatpush3.bf16.msra.mxu0 %v1527_v7 }
 0x133   :  { %1412 = vmatprep.subr.bf16.mxu0 %v1623_v21 }
 0x136   :  { %1413 = vmatpush3.bf16.msra.mxu0 %v1528_v8 }
 0x137   :  { %1414 = vmatprep.subr.bf16.mxu0 %v1623_v21 }
 0x13a   :  { %1415 = vmatpush3.bf16.msra.mxu0 %v1529_v9 }
 0x13b   :  { %1416 = vmatprep.subr.bf16.mxu0 %v1623_v21 }
 0x13e   :  { %1417 = vmatpush3.bf16.msra.mxu0 %v1530_v10 }
 0x13f   :  { %1418 = vmatprep.subr.bf16.mxu0 %v1623_v21 }
 0x142   :  { %1419 = vmatpush3.bf16.msra.mxu0 %v1531_v11 }
 0x143   :  { %1420 = vmatprep.subr.bf16.mxu0 %v1623_v21 }
 0x146   :  { %1421 = vmatpush3.bf16.msra.mxu0 %v1532_v12 }
 0x1fc   :  { %v1347_v13 = vpop.f32.mrb[4].mxu0 }
 0x1fd   :  { %v1369_v14 = vpop.f32.mrb[4].mxu1  ;;  %v1348_v16 = vpop.f32.mrb[5].mxu0 }
 0x1fe   :  { %v1349_v17 = vadd.f32 %v1348_v16, %v1347_v13  ;;  %v1370_v18 = vpop.f32.mrb[5].mxu1  ;;  %v1350_v19 = vpop.f32.mrb[6].mxu0 }
 0x1ff   :  { %v1371_v20 = vadd.f32 %v1370_v18, %v1369_v14  ;;  %v1372_v22 = vpop.f32.mrb[6].mxu1  ;;  %v1351_v25 = vpop.f32.mrb[7].mxu0 }
 0x200   :  { %v748_v26 = vadd.f32 %v1349_v17, %v1265_v15  ;;  %v1373_v28 = vpop.f32.mrb[7].mxu1 }
 0x202   :  { %v788_v29 = vadd.f32 %v1371_v20, %v748_v26 }
 0x204   :  { %v794_v30 = vmin.f32 %v788_v29, 0.0  ;;  %vm793_vm8 = vcmp.gt.f32.partialorder %v788_v29, 0.0 }
 0x206   :  { %v795_v31 = vmul.f32 1.442695, %v794_v30 }
 0x208   :  { %1563 = vpow2.f32 %v795_v31 }
 0x212   :  { %v1564_v21 = vpop.eup %1563 }
 0x213   :  { %v1298_v32 = vadd.f32 -1.0, %v1564_v21 }
 0x215   :  { %v798_v33 = vsel %vm793_vm8, %v788_v29, %v1298_v32 }
 0x216   :  { %v799_v34 = vpack.c.bf16 %v798_v33, %v798_v33 }
 0x218   :  { %1423 = vmatmul.mubr.bf16.vlgmr.msra.gmra.mrb[8].mxu0 %v799_v34 }
 0x2eb   :  { %v905_v42 = vpop.f32.mrb[8].mxu0 }
 0x2ec   :  { %v906_v43 = vadd.f32 %v1299_v41, %v905_v42  ;;  %v1424_v44 = vpop.f32.mrb[9].mxu0 }
 0x2ed   :  { %v908_v45 = vpop.f32.mrb[10].mxu0 }
 0x2ee   :  { %v912_v46 = vmin.f32 %v906_v43, 0.0  ;;  %v1425_v47 = vpop.f32.mrb[11].mxu0  ;;  %vm911_vm9 = vcmp.gt.f32.partialorder %v906_v43, 0.0 }
 0x2f0   :  { %v913_v48 = vmul.f32 1.442695, %v912_v46 }
 0x2f2   :  { %1565 = vpow2.f32 %v913_v48 }
 0x2fc   :  { %v1566_v49 = vpop.eup %1565 }
 0x2fd   :  { %v1308_v50 = vadd.f32 -1.0, %v1566_v49 }
 0x2ff   :  { %v916_v51 = vsel %vm911_vm9, %v906_v43, %v1308_v50 }
 0x300   :  { %v917_v53 = vpack.c.bf16 %v916_v51, %v916_v51 }
 0x302   :  { %1313 = vmatmul.mubr.msk.bf16.vlgmr.msra.gmra.mrb[8].mxu1 %vm954_vm10, %v917_v53 }
 0x303   :  { %1385 = vmatpush3.bf16.msra.mxu1 %v1540_v52 }
 0x304   :  { %1386 = vmatprep.subr.bf16.mxu1 %v1541_v54 }
 0x307   :  { %1387 = vmatpush3.bf16.msra.mxu1 %v1542_v55 }
 0x308   :  { %1388 = vmatprep.subr.bf16.mxu1 %v1543_v56 }
 0x30b   :  { %1389 = vmatpush3.bf16.msra.mxu1 %v1544_v57 }
 0x30c   :  { %1390 = vmatprep.subr.bf16.mxu1 %v1545_v58 }
 0x30f   :  { %1391 = vmatpush3.bf16.msra.mxu1 %v1546_v59 }
 0x310   :  { %1392 = vmatprep.subr.bf16.mxu1 %v1547_v60 }
 0x313   :  { %1393 = vmatpush3.bf16.msra.mxu1 %v1548_v61 }
 0x314   :  { %1394 = vmatprep.subr.bf16.mxu1 %v1549_v62 }
 0x317   :  { %1395 = vmatpush3.bf16.msra.mxu1 %v1550_v63 }
 0x318   :  { %1396 = vmatprep.subr.bf16.mxu1 %v1551_v0 }
 0x31b   :  { %1397 = vmatpush3.bf16.msra.mxu1 %v1552_v1 }
 0x31c   :  { %1398 = vmatprep.subr.bf16.mxu1 %v1553_v2 }
 0x31f   :  { %1399 = vmatpush3.bf16.msra.mxu1 %v1554_v3 }
 0x3d5   :  { %v992_v7 = vpop.f32.mrb[8].mxu1 }
 0x3d6   :  { %v993_v8 = vadd.f32 %v992_v7, %v927_v5  ;;  %v994_v9 = vpop.f32.mrb[9].mxu1 }
 0x3d7   :  { %v995_v10 = vadd.f32 %v994_v9, %v931_v6  ;;  %v996_v11 = vpop.f32.mrb[10].mxu1 }
 0x3d8   :  { %v999_v12 = vmax.f32 %v993_v8, 0.0  ;;  %v997_v13 = vpop.f32.mrb[11].mxu1 }
 0x3d9   :  { %v1000_v14 = vmax.f32 %v995_v10, 0.0 }
 0x3da   :  { %v1001_v16 = vpack.c.bf16 %v999_v12, %v999_v12 }
 0x3db   :  { %v1002_v15 = vpack.c.bf16 %v1000_v14, %v1000_v14 }
 0x3dd   :  { %1170 = vmatprep.mubr.bf16.mxu1 %v1002_v15 }
 0x3de   :  { %1171 = vmatmul.mubr.bf16.vlgmr.msra.gmra.mrb[12].mxu1 %v1001_v16 }
 0x4b1   :  { %v1400_v17 = vpop.f32.mrb[12].mxu1 }
 0x4b2   :  { %v1401_v18 = vpop.f32.mrb[13].mxu1 }
 0x4b3   :  { %v1402_v23 = vadd.f32 %v1401_v18, %v1400_v17  ;;  %v1403_v27 = vpop.f32.mrb[14].mxu1 }
 0x4b4   :  { %v1404_v19 = vpop.f32.mrb[15].mxu1 }
 0x4b5   :  { %v1173_v20 = vadd.f32 %v1402_v23, %v1314_v24 }
 0x4b7   :  { %1194 = vrot.lane.b32.xlu1 %v1173_v20, %s1626_s27  ;;  %v1179_v22 = vsel %vm1178_vm11, %v1173_v20, -inf }
 0x4b8   :  { %1180 = vmax.xlane.f32.xlu0 %v1179_v22 }
 0x529   :  { %v1195_v25 = vpop.permute.xlu1 %1194 }
 0x52a   :  { %1198 = vst.msk [vmem:[%s1977_s12] sm:$0x3] %vm1197_vm12, %v1195_v25  ;;  %s1593_s12 = scalar_lea.vmem %s1206_s30, 32 }
 0x52b   :  { %p1594_p8 = scmp.ne.s32.totalorder %s1206_s30, %s1593_s12  ;;  %p1599_p10 = scmp.lt.s32.totalorder %s1593_s12, %s1593_s12 }
 0x52d   :  { %p1600_p11 = por %p1599_p10, %p1598_p9 }
 0x52f   :  { %p1601_p12 = pnand %p1600_p11, %p1594_p8 }
 0x545   :  { %v1181_v26 = vpop.xlane.xlu0 %1180 }
 0x546   :  { %v1182_v28 = vsub.f32 %v1173_v20, %v1181_v26 }
 0x548   :  { %v1183_v29 = vmul.f32 1.442695, %v1182_v28 }
 0x54a   :  { %1567 = vpow2.f32 %v1183_v29 }
 0x554   :  { %v1568_v30 = vpop.eup %1567 }
 0x555   :  { %v1185_v31 = vsel %vm1178_vm11, %v1568_v30, 0.0 }
 0x556   :  { %1186 = vadd.xlane.f32.xlu0 %v1185_v31 }
 0x5e3   :  { %v1187_v21 = vpop.xlane.xlu0 %1186 }
 0x5e4   :  { %1569 = vlog2.f32 %v1187_v21 }
 0x5ee   :  { %v1570_v32 = vpop.eup %1569 }
 0x5ef   :  { %v1189_v33 = vmul.f32 0.6931472, %v1570_v32 }
 0x5f1   :  { %v1190_v34 = vadd.f32 %v1189_v33, %v1181_v26 }
 0x5f3   :  { %v1191_v35 = vsub.f32 %v1173_v20, %v1190_v34 }
 0x5f5   :  { %1192 = vst.msk [vmem:[#allocation5] sm:$0x3] %vm1178_vm11, %v1191_v35 }
 0x5f6   :  { %1604 = shalt.err (!%p1601_p12)
}
 0x5f7   :  { %s1605_s14 = scalar_lea.hbm %s1976_s11, 32 }
 0x5f8   :  { %p1606_p13 = scmp.ne.s32.totalorder %s1976_s11, %s1605_s14  ;;  %p1609_p0 = scmp.lt.u32.totalorder %s1605_s14, %s1976_s11 }
 0x5fa   :  { %p1611_p1 = pnand %p1609_p0, %p1606_p13 }
 0x5fc   :  { %1614 = shalt.err (!%p1611_p1)
}
 0x5fd   :  { %1208 = dma.vmem_to_hbm [thread:$0]  %s1206_s30, 32, %s1976_s11, [#allocation4]  }
 0x5fe   :  { %1617 = dma.done.wait [#allocation4], 32  }
 0x5ff   :  { %1618 = vsyncadd [#allocation4], 4294967264 }
 0x600   :  { %1216 = vsyncpa [#allocation3], 1 }
 0x601   :  { %1217 = vsyncpa [#allocation4], 1 }

</bundles_post_ra>
